<compile_context>
chip_gen: v7x
topology: tpu7x:2x2x1
jax: 0.10.0
libtpu: 0.0.40
codegen_flags: <defaults>
</compile_context>

<pallas_src>
import math

import jax
import jax.numpy as jnp
from jax.experimental import pallas as pl
from jax.experimental.pallas import tpu as pltpu

HIDDEN = 256           # first/second hidden width (PyTorch Linear(state, 256))
HIDDEN2 = 64           # logical third-layer width (PyTorch Linear(256, 64))
HIDDEN2_PAD = 128      # third layer zero-padded to a full lane group in-kernel
DEFAULT_TM = 1024      # max rows per grid step (fits v5e scoped VMEM w/ headroom)
MIN_SPLIT_ROWS = 128   # above 2*this many rows, use >=2 tiles (v7x megacore)


def _round_up(x, m):
    return ((x + m - 1) // m) * m


def _choose_tiling(batch, tm_cap):
    """Pick (block_rows, padded_batch, n_tiles) with <=8 rows of padding waste."""
    padded8 = _round_up(max(batch, 8), 8)
    n_tiles = pl.cdiv(padded8, tm_cap)
    if padded8 >= 2 * MIN_SPLIT_ROWS:
        n_tiles = max(n_tiles, 2)          # keep both v7x TensorCores busy
    block_rows = _round_up(pl.cdiv(padded8, n_tiles), 8)
    padded_batch = n_tiles * block_rows
    return block_rows, padded_batch, n_tiles


def _actor_kernel(x_ref, w1_ref, b1_ref, w2_ref, b2_ref, w3_ref, b3_ref,
                  w4_ref, b4_ref, y_ref):
    # bf16 MXU operands, f32 accumulation + f32 bias/ReLU on the VPU.
    wdt = w1_ref.dtype                      # bfloat16

    h1 = jnp.dot(x_ref[...], w1_ref[...],
                 preferred_element_type=jnp.float32) + b1_ref[...]
    h1 = jnp.maximum(h1, 0.0)

    h2 = jnp.dot(h1.astype(wdt), w2_ref[...],
                 preferred_element_type=jnp.float32) + b2_ref[...]
    h2 = jnp.maximum(h2, 0.0)

    h3 = jnp.dot(h2.astype(wdt), w3_ref[...],
                 preferred_element_type=jnp.float32) + b3_ref[...]
    h3 = jnp.maximum(h3, 0.0)

    y = jnp.dot(h3.astype(wdt), w4_ref[...],
                preferred_element_type=jnp.float32) + b4_ref[...]
    # Lane-dense bf16 store; slicing/upcasting happens in the wrapper.
    y_ref[...] = y.astype(y_ref.dtype)


def actor_forward(x, params, action_dim, *, tm=DEFAULT_TM):
    """Fused ActorNetwork forward. Returns (means, log_stds), each (batch, action_dim) f32."""
    w1, b1, w2, b2, w3, b3, w4, b4 = params
    batch, state_dim = x.shape
    out_dim = 2 * action_dim
    out_pad = w4.shape[1]
    assert out_pad % 128 == 0 and out_pad >= out_dim, \
        "final weight must be lane-padded to a multiple of 128 covering 2*action_dim"

    block_rows, padded_batch, n_tiles = _choose_tiling(batch, tm)

    # bf16 input: the f32 precision would be discarded by the bf16 MXU anyway.
    x = x.astype(jnp.bfloat16)
    if padded_batch != batch:
        x = jnp.pad(x, ((0, padded_batch - batch), (0, 0)))

    # Weights + biases: constant index_map -> DMA'd once, VMEM-resident.
    def const(arr):
        return pl.BlockSpec(arr.shape, lambda i, nd=arr.ndim: (0,) * nd)

    in_specs = [
        pl.BlockSpec((block_rows, state_dim), lambda i: (i, 0)),   # x tile
        const(w1), const(b1),
        const(w2), const(b2),
        const(w3), const(b3),
        const(w4), const(b4),
    ]
    out_specs = pl.BlockSpec((block_rows, out_pad), lambda i: (i, 0))

    nbytes = lambda a: a.size * a.dtype.itemsize
    bytes_accessed = (nbytes(x) + sum(nbytes(p) for p in params)
                      + padded_batch * out_pad * 2)
    flops = 2 * padded_batch * (state_dim * w1.shape[1]
                                + w2.shape[0] * w2.shape[1]
                                + w3.shape[0] * w3.shape[1]
                                + w4.shape[0] * w4.shape[1])

    y = pl.pallas_call(
        _actor_kernel,
        out_shape=jax.ShapeDtypeStruct((padded_batch, out_pad), jnp.bfloat16),
        grid=(n_tiles,),
        in_specs=in_specs,
        out_specs=out_specs,
        compiler_params=pltpu.CompilerParams(
            dimension_semantics=("parallel",),
            vmem_limit_bytes=32 << 20),
        cost_estimate=pl.CostEstimate(flops=flops, transcendentals=0,
                                      bytes_accessed=bytes_accessed),
    )(x, w1, b1, w2, b2, w3, b3, w4, b4)

    y = y[:batch, :out_dim].astype(jnp.float32)    # drop batch + lane padding
    return y[:, :action_dim], y[:, action_dim:]    # chunk(2, dim=-1)


def init_actor_params(key, state_dim, action_dim):
    """kaiming_normal_ (fan_in, gain=sqrt(2)) weights, zero biases.

    Weights are stored transposed vs. PyTorch, i.e. (in_features, out_features),
    in bfloat16; biases in float32.  Layer 3 is zero-padded 64->128 output
    lanes, layer 4 gets matching zero rows and its output lanes are padded to
    round_up(2*action_dim, 128); all padding is mathematically inert."""
    out_dim = 2 * action_dim
    out_pad = _round_up(out_dim, 128)
    dims = [(state_dim, HIDDEN), (HIDDEN, HIDDEN),
            (HIDDEN, HIDDEN2), (HIDDEN2, out_dim)]
    padded = [(state_dim, HIDDEN), (HIDDEN, HIDDEN),
              (HIDDEN, HIDDEN2_PAD), (HIDDEN2_PAD, out_pad)]
    params = []
    for (fan_in, fan_out), (pin, pout) in zip(dims, padded):
        key, wk = jax.random.split(key)
        std = math.sqrt(2.0 / fan_in)    # kaiming_normal_, mode='fan_in', a=0
        w = jax.random.normal(wk, (fan_in, fan_out), dtype=jnp.float32) * std
        b = jnp.zeros((1, fan_out), dtype=jnp.float32)
        w = jnp.pad(w, ((0, pin - fan_in), (0, pout - fan_out)))
        b = jnp.pad(b, ((0, 0), (0, pout - fan_out)))
        params.extend([w.astype(jnp.bfloat16), b])   # bf16 weights, f32 biases
    return tuple(params)


def _reference_forward(x, params, action_dim):
    """Pure-JAX reference of the same math (bf16 MXU operands, f32 accumulation)."""
    w1, b1, w2, b2, w3, b3, w4, b4 = params

    def lin(h, w, b):
        return jnp.dot(h.astype(w.dtype), w,
                       preferred_element_type=jnp.float32) + b

    h = jnp.maximum(lin(x, w1, b1), 0.0)
    h = jnp.maximum(lin(h, w2, b2), 0.0)
    h = jnp.maximum(lin(h, w3, b3), 0.0)
    y = lin(h, w4, b4)[:, :2 * action_dim]
    y = y.astype(jnp.bfloat16).astype(jnp.float32)   # mirror kernel output dtype
    return y[:, :action_dim], y[:, action_dim:]


if __name__ == "__main__":
    key = jax.random.PRNGKey(0)
    state_dim = 16
    action_dim = 4           # action_shape = (4,)

    key, pk = jax.random.split(key)
    params = init_actor_params(pk, state_dim, action_dim)
    fwd = jax.jit(actor_forward, static_argnums=(2,))

    # Small batch (single-tile path) and a medium batch (multi-tile / megacore
    # path), both checked against the pure-JAX reference.
    for batch in (8, 272):
        key, xk = jax.random.split(key)
        x = jax.random.normal(xk, (batch, state_dim), dtype=jnp.float32)

        means, log_stds = fwd(x, params, action_dim)
        jax.block_until_ready((means, log_stds))

        ref_means, ref_log_stds = _reference_forward(x, params, action_dim)
        assert means.shape == (batch, action_dim)
        assert log_stds.shape == (batch, action_dim)
        assert jnp.allclose(means, ref_means, atol=2e-2, rtol=2e-2)
        assert jnp.allclose(log_stds, ref_log_stds, atol=2e-2, rtol=2e-2)

    print("KERNEL_OK")
</pallas_src>

<mosaic_0001>
module attributes {stable_mosaic.version = 11 : i64} {
  func.func @_actor_kernel(%arg0: i32, %arg1: memref<8x16xbf16, #tpu.memory_space<vmem>>, %arg2: memref<16x256xbf16, #tpu.memory_space<vmem>>, %arg3: memref<1x256xf32, #tpu.memory_space<vmem>>, %arg4: memref<256x256xbf16, #tpu.memory_space<vmem>>, %arg5: memref<1x256xf32, #tpu.memory_space<vmem>>, %arg6: memref<256x128xbf16, #tpu.memory_space<vmem>>, %arg7: memref<1x128xf32, #tpu.memory_space<vmem>>, %arg8: memref<128x128xbf16, #tpu.memory_space<vmem>>, %arg9: memref<1x128xf32, #tpu.memory_space<vmem>>, %arg10: memref<8x128xbf16, #tpu.memory_space<vmem>>) attributes {dimension_semantics = [#tpu.dimension_semantics<parallel>], iteration_bounds = array<i64: 1>, scalar_prefetch = 0 : i64, scratch_operands = 0 : i64, tpu.core_type = #tpu.core_type<tc>, window_params = [{transform_indices = @transform_0, window_bounds = array<i64: 8, 16>}, {pipeline_mode = #tpu.pipeline_mode<synchronous>, transform_indices = @transform_1, window_bounds = array<i64: 16, 256>}, {pipeline_mode = #tpu.pipeline_mode<synchronous>, transform_indices = @transform_2, window_bounds = array<i64: 1, 256>}, {pipeline_mode = #tpu.pipeline_mode<synchronous>, transform_indices = @transform_3, window_bounds = array<i64: 256, 256>}, {pipeline_mode = #tpu.pipeline_mode<synchronous>, transform_indices = @transform_4, window_bounds = array<i64: 1, 256>}, {pipeline_mode = #tpu.pipeline_mode<synchronous>, transform_indices = @transform_5, window_bounds = array<i64: 256, 128>}, {pipeline_mode = #tpu.pipeline_mode<synchronous>, transform_indices = @transform_6, window_bounds = array<i64: 1, 128>}, {pipeline_mode = #tpu.pipeline_mode<synchronous>, transform_indices = @transform_7, window_bounds = array<i64: 128, 128>}, {pipeline_mode = #tpu.pipeline_mode<synchronous>, transform_indices = @transform_8, window_bounds = array<i64: 1, 128>}, {transform_indices = @transform_9, window_bounds = array<i64: 8, 128>}]} {
    %c0 = arith.constant 0 : index
    %c0_0 = arith.constant 0 : index
    %0 = vector.load %arg1[%c0, %c0_0] : memref<8x16xbf16, #tpu.memory_space<vmem>>, vector<8x16xbf16>
    %c0_1 = arith.constant 0 : index
    %c0_2 = arith.constant 0 : index
    %1 = vector.load %arg2[%c0_1, %c0_2] : memref<16x256xbf16, #tpu.memory_space<vmem>>, vector<16x256xbf16>
    %cst = arith.constant dense<0.000000e+00> : vector<8x256xf32>
    %2 = tpu.matmul %0, %1, %cst {dimension_numbers = #tpu.dot_dimension_numbers<[1], [0], [0], [1], [0, 0, 1, 1], [], []>} : vector<8x16xbf16>, vector<16x256xbf16>, vector<8x256xf32> -> vector<8x256xf32>
    %c0_3 = arith.constant 0 : index
    %c0_4 = arith.constant 0 : index
    %3 = vector.load %arg3[%c0_3, %c0_4] : memref<1x256xf32, #tpu.memory_space<vmem>>, vector<1x256xf32>
    %4 = vector.broadcast %3 : vector<1x256xf32> to vector<8x256xf32>
    %5 = arith.addf %2, %4 : vector<8x256xf32>
    %cst_5 = arith.constant 0.000000e+00 : f32
    %6 = vector.broadcast %cst_5 : f32 to vector<8x256xf32>
    %7 = arith.maximumf %5, %6 : vector<8x256xf32>
    %8 = arith.truncf %7 : vector<8x256xf32> to vector<8x256xbf16>
    %c0_6 = arith.constant 0 : index
    %c0_7 = arith.constant 0 : index
    %9 = vector.load %arg4[%c0_6, %c0_7] : memref<256x256xbf16, #tpu.memory_space<vmem>>, vector<256x256xbf16>
    %cst_8 = arith.constant dense<0.000000e+00> : vector<8x256xf32>
    %10 = tpu.matmul %8, %9, %cst_8 {dimension_numbers = #tpu.dot_dimension_numbers<[1], [0], [0], [1], [0, 0, 1, 1], [], []>} : vector<8x256xbf16>, vector<256x256xbf16>, vector<8x256xf32> -> vector<8x256xf32>
    %c0_9 = arith.constant 0 : index
    %c0_10 = arith.constant 0 : index
    %11 = vector.load %arg5[%c0_9, %c0_10] : memref<1x256xf32, #tpu.memory_space<vmem>>, vector<1x256xf32>
    %12 = vector.broadcast %11 : vector<1x256xf32> to vector<8x256xf32>
    %13 = arith.addf %10, %12 : vector<8x256xf32>
    %cst_11 = arith.constant 0.000000e+00 : f32
    %14 = vector.broadcast %cst_11 : f32 to vector<8x256xf32>
    %15 = arith.maximumf %13, %14 : vector<8x256xf32>
    %16 = arith.truncf %15 : vector<8x256xf32> to vector<8x256xbf16>
    %c0_12 = arith.constant 0 : index
    %c0_13 = arith.constant 0 : index
    %17 = vector.load %arg6[%c0_12, %c0_13] : memref<256x128xbf16, #tpu.memory_space<vmem>>, vector<256x128xbf16>
    %cst_14 = arith.constant dense<0.000000e+00> : vector<8x128xf32>
    %18 = tpu.matmul %16, %17, %cst_14 {dimension_numbers = #tpu.dot_dimension_numbers<[1], [0], [0], [1], [0, 0, 1, 1], [], []>} : vector<8x256xbf16>, vector<256x128xbf16>, vector<8x128xf32> -> vector<8x128xf32>
    %c0_15 = arith.constant 0 : index
    %c0_16 = arith.constant 0 : index
    %19 = vector.load %arg7[%c0_15, %c0_16] : memref<1x128xf32, #tpu.memory_space<vmem>>, vector<1x128xf32>
    %20 = vector.broadcast %19 : vector<1x128xf32> to vector<8x128xf32>
    %21 = arith.addf %18, %20 : vector<8x128xf32>
    %cst_17 = arith.constant 0.000000e+00 : f32
    %22 = vector.broadcast %cst_17 : f32 to vector<8x128xf32>
    %23 = arith.maximumf %21, %22 : vector<8x128xf32>
    %24 = arith.truncf %23 : vector<8x128xf32> to vector<8x128xbf16>
    %c0_18 = arith.constant 0 : index
    %c0_19 = arith.constant 0 : index
    %25 = vector.load %arg8[%c0_18, %c0_19] : memref<128x128xbf16, #tpu.memory_space<vmem>>, vector<128x128xbf16>
    %cst_20 = arith.constant dense<0.000000e+00> : vector<8x128xf32>
    %26 = tpu.matmul %24, %25, %cst_20 {dimension_numbers = #tpu.dot_dimension_numbers<[1], [0], [0], [1], [0, 0, 1, 1], [], []>} : vector<8x128xbf16>, vector<128x128xbf16>, vector<8x128xf32> -> vector<8x128xf32>
    %c0_21 = arith.constant 0 : index
    %c0_22 = arith.constant 0 : index
    %27 = vector.load %arg9[%c0_21, %c0_22] : memref<1x128xf32, #tpu.memory_space<vmem>>, vector<1x128xf32>
    %28 = vector.broadcast %27 : vector<1x128xf32> to vector<8x128xf32>
    %29 = arith.addf %26, %28 : vector<8x128xf32>
    %30 = arith.truncf %29 : vector<8x128xf32> to vector<8x128xbf16>
    %c0_23 = arith.constant 0 : index
    %c0_24 = arith.constant 0 : index
    %31 = vector.load %arg10[%c0_23, %c0_24] : memref<8x128xbf16, #tpu.memory_space<vmem>>, vector<8x128xbf16>
    tpu.vector_store %arg10[%c0_23, %c0_24], %30 {strides = array<i32>} : memref<8x128xbf16, #tpu.memory_space<vmem>>, vector<8x128xbf16>,
    return
  }
  func.func @transform_0(%arg0: i32) -> (i32, i32) {
    %c0_i32 = arith.constant 0 : i32
    %c0_i32_0 = arith.constant 0 : i32
    return %arg0, %c0_i32 : i32, i32
  }
  func.func @transform_1(%arg0: i32) -> (i32, i32) {
    %c0_i32 = arith.constant 0 : i32
    %c0_i32_0 = arith.constant 0 : i32
    %c0_i32_1 = arith.constant 0 : i32
    return %c0_i32, %c0_i32_0 : i32, i32
  }
  func.func @transform_2(%arg0: i32) -> (i32, i32) {
    %c0_i32 = arith.constant 0 : i32
    %c0_i32_0 = arith.constant 0 : i32
    %c0_i32_1 = arith.constant 0 : i32
    return %c0_i32, %c0_i32_0 : i32, i32
  }
  func.func @transform_3(%arg0: i32) -> (i32, i32) {
    %c0_i32 = arith.constant 0 : i32
    %c0_i32_0 = arith.constant 0 : i32
    %c0_i32_1 = arith.constant 0 : i32
    return %c0_i32, %c0_i32_0 : i32, i32
  }
  func.func @transform_4(%arg0: i32) -> (i32, i32) {
    %c0_i32 = arith.constant 0 : i32
    %c0_i32_0 = arith.constant 0 : i32
    %c0_i32_1 = arith.constant 0 : i32
    return %c0_i32, %c0_i32_0 : i32, i32
  }
  func.func @transform_5(%arg0: i32) -> (i32, i32) {
    %c0_i32 = arith.constant 0 : i32
    %c0_i32_0 = arith.constant 0 : i32
    %c0_i32_1 = arith.constant 0 : i32
    return %c0_i32, %c0_i32_0 : i32, i32
  }
  func.func @transform_6(%arg0: i32) -> (i32, i32) {
    %c0_i32 = arith.constant 0 : i32
    %c0_i32_0 = arith.constant 0 : i32
    %c0_i32_1 = arith.constant 0 : i32
    return %c0_i32, %c0_i32_0 : i32, i32
  }
  func.func @transform_7(%arg0: i32) -> (i32, i32) {
    %c0_i32 = arith.constant 0 : i32
    %c0_i32_0 = arith.constant 0 : i32
    %c0_i32_1 = arith.constant 0 : i32
    return %c0_i32, %c0_i32_0 : i32, i32
  }
  func.func @transform_8(%arg0: i32) -> (i32, i32) {
    %c0_i32 = arith.constant 0 : i32
    %c0_i32_0 = arith.constant 0 : i32
    %c0_i32_1 = arith.constant 0 : i32
    return %c0_i32, %c0_i32_0 : i32, i32
  }
  func.func @transform_9(%arg0: i32) -> (i32, i32) {
    %c0_i32 = arith.constant 0 : i32
    %c0_i32_0 = arith.constant 0 : i32
    return %arg0, %c0_i32 : i32, i32
  }
}

</mosaic_0001>

<bundles_post_ra>
// kernel: actor_forward.1
= control target key start
LH: loop header
LB: loop body
LE: loop exit
PB: predicated region body
PF: predicated region fallthrough
CT: control target
= control target key end

     0   :  { %14 = vsyncpa [#allocation3], 0  ;;  %s1134_s0 = inlined_call_operand.vmem [shape: bf16[8,16], index: 0, kind: input, shape index: {}]   ;;  %s1135_s1 = inlined_call_operand.hbm [shape: bf16[16,256], index: 1, kind: input, shape index: {}]   ;;  %s1136_s2 = inlined_call_operand.vmem [shape: f32[1,256], index: 2, kind: input, shape index: {}]   ;;  %s1137_s3 = inlined_call_operand.hbm [shape: bf16[256,256], index: 3, kind: input, shape index: {}]   ;;  %s1138_s4 = inlined_call_operand.vmem [shape: f32[1,256], index: 4, kind: input, shape index: {}]   ;;  %s1139_s5 = inlined_call_operand.hbm [shape: bf16[256,128], index: 5, kind: input, shape index: {}]   ;;  %s1140_s6 = inlined_call_operand.vmem [shape: f32[1,128], index: 6, kind: input, shape index: {}]   ;;  %s1141_s7 = inlined_call_operand.hbm [shape: bf16[128,128], index: 7, kind: input, shape index: {}]   ;;  %s1142_s8 = inlined_call_operand.vmem [shape: f32[1,128], index: 8, kind: input, shape index: {}]   ;;  %s1143_s9 = inlined_call_operand.vmem [shape: bf16[8,128], index: 9, kind: output, shape index: {}]  }
   0x1   :  { %15 = vsyncpa [#allocation5], 0 }
   0x2   :  { %16 = vsyncpa [#allocation8], 0  ;;  %s1000_s30 = smov [#allocation4]   ;;  %s1001_s11 = smov [#allocation2]  }
   0x3   :  { %s38_s10 = sshll.u32 %s1000_s30, 4  ;;  %s24_s12 = sshll.u32 %s1001_s11, 4  ;;  %s39_s10 = int_to_ptr.vmem [resolvable:$true] %s38_s10  ;;  %s1061_s12 = int_to_ptr.vmem [resolvable:$true] %s24_s12 }
   0x4   :  { %s906_s15 = scalar_lea.hbm %s1137_s3, 4096 }
   0x5   :  { %p907_p0 = scmp.ne.s32.totalorder %s1137_s3, %s906_s15  ;;  %p910_p1 = scmp.lt.u32.totalorder %s906_s15, %s1137_s3 }
   0x7   :  { %p912_p2 = pnand %p910_p1, %p907_p0 }
   0x9   :  { %915 = shalt.err (!%p912_p2)
}
   0xa   :  { %s916_s20 = scalar_lea.vmem %s39_s10, 4096  ;;  %p921_p4 = scmp.lt.s32.totalorder %s39_s10, %s39_s10 }
   0xb   :  { %p917_p3 = scmp.ne.s32.totalorder %s39_s10, %s916_s20  ;;  %p922_p5 = scmp.lt.s32.totalorder %s916_s20, %s916_s20 }
   0xd   :  { %p923_p6 = por %p922_p5, %p921_p4 }
   0xf   :  { %p924_p7 = pnand %p923_p6, %p917_p3 }
  0x11   :  { %927 = shalt.err (!%p924_p7)
}
  0x12   :  { %s1002_s21 = smov 128   ;;  %s1003_s22 = smov 8  }
  0x13   :  { %44 = dma.hbm_to_vmem [thread:$0]  %s1137_s3, 4096, %s39_s10, [#allocation5], %s1002_s21, %s1002_s21, %s1003_s22  }
  0x14   :  { %s928_s27 = scalar_lea.hbm %s1135_s1, 256 }
  0x15   :  { %p929_p8 = scmp.ne.s32.totalorder %s1135_s1, %s928_s27  ;;  %p932_p9 = scmp.lt.u32.totalorder %s928_s27, %s1135_s1 }
  0x17   :  { %p934_p10 = pnand %p932_p9, %p929_p8 }
  0x19   :  { %937 = shalt.err (!%p934_p10)
}
  0x1a   :  { %s938_s13 = scalar_lea.vmem %s1061_s12, 256  ;;  %p943_p12 = scmp.lt.s32.totalorder %s1061_s12, %s1061_s12 }
  0x1b   :  { %p939_p11 = scmp.ne.s32.totalorder %s1061_s12, %s938_s13  ;;  %p944_p13 = scmp.lt.s32.totalorder %s938_s13, %s938_s13 }
  0x1d   :  { %p945_p0 = por %p944_p13, %p943_p12 }
  0x1f   :  { %p946_p1 = pnand %p945_p0, %p939_p11 }
  0x21   :  { %949 = shalt.err (!%p946_p1)
}
  0x22   :  { %30 = dma.hbm_to_vmem [thread:$0]  %s1135_s1, 256, %s1061_s12, [#allocation3], %s1002_s21, %s1002_s21, %s1003_s22  }
  0x23   :  { %s1004_s14 = smov [#allocation6]   ;;  %s950_s18 = scalar_lea.hbm %s1139_s5, 2048 }
  0x24   :  { %s52_s15 = sshll.u32 %s1004_s14, 4  ;;  %p951_p2 = scmp.ne.s32.totalorder %s1139_s5, %s950_s18  ;;  %s53_s15 = int_to_ptr.vmem [resolvable:$true] %s52_s15 }
  0x25   :  { %p954_p3 = scmp.lt.u32.totalorder %s950_s18, %s1139_s5 }
  0x27   :  { %p956_p4 = pnand %p954_p3, %p951_p2 }
  0x29   :  { %959 = shalt.err (!%p956_p4)
}
  0x2a   :  { %s960_s25 = scalar_lea.vmem %s53_s15, 2048  ;;  %p965_p6 = scmp.lt.s32.totalorder %s53_s15, %s53_s15 }
  0x2b   :  { %p961_p5 = scmp.ne.s32.totalorder %s53_s15, %s960_s25  ;;  %p966_p7 = scmp.lt.s32.totalorder %s960_s25, %s960_s25 }
  0x2d   :  { %p967_p8 = por %p966_p7, %p965_p6 }
  0x2f   :  { %p968_p9 = pnand %p967_p8, %p961_p5 }
  0x31   :  { %971 = shalt.err (!%p968_p9)
}
  0x32   :  { %s1005_s1 = smov 64   ;;  %s1006_s12 = smov 4  }
  0x33   :  { %58 = dma.hbm_to_vmem [thread:$0]  %s1139_s5, 2048, %s53_s15, [#allocation5], %s1005_s1, %s1005_s1, %s1006_s12  }
  0x34   :  { %s1007_s26 = smov [#allocation7]   ;;  %s972_s30 = scalar_lea.hbm %s1141_s7, 1024 }
  0x35   :  { %s66_s27 = sshll.u32 %s1007_s26, 4  ;;  %p973_p10 = scmp.ne.s32.totalorder %s1141_s7, %s972_s30  ;;  %s67_s27 = int_to_ptr.vmem [resolvable:$true] %s66_s27 }
  0x36   :  { %p976_p11 = scmp.lt.u32.totalorder %s972_s30, %s1141_s7 }
  0x38   :  { %p978_p12 = pnand %p976_p11, %p973_p10 }
  0x3a   :  { %981 = shalt.err (!%p978_p12)
}
  0x3b   :  { %s982_s14 = scalar_lea.vmem %s67_s27, 1024  ;;  %p987_p0 = scmp.lt.s32.totalorder %s67_s27, %s67_s27 }
  0x3c   :  { %p983_p13 = scmp.ne.s32.totalorder %s67_s27, %s982_s14  ;;  %p988_p1 = scmp.lt.s32.totalorder %s982_s14, %s982_s14 }
  0x3e   :  { %p989_p2 = por %p988_p1, %p987_p0 }
  0x40   :  { %p990_p3 = pnand %p989_p2, %p983_p13 }
  0x42   :  { %993 = shalt.err (!%p990_p3)
}
  0x43   :  { %72 = dma.hbm_to_vmem [thread:$0]  %s1141_s7, 1024, %s67_s27, [#allocation8], %s1005_s1, %s1005_s1, %s1006_s12  }
  0x44   :  { %994 = dma.done.wait [#allocation3], 256  }
  0x45   :  { %995 = vsyncadd [#allocation3], 4294967040 }
  0x46   :  { %996 = dma.done.wait [#allocation5], 6144  }
  0x47   :  { %997 = vsyncadd [#allocation5], 4294961152 }
  0x48   :  { %998 = dma.done.wait [#allocation8], 1024  }
  0x49   :  { %999 = vsyncadd [#allocation8], 4294966272  ;;  %v1008_v0 = vmov 0   ;;  %v831_v1 = vld [vmem:[#allocation2 + $0x4] ss:$8 sps:$4 sm:$0xff]   ;;  %vm113_vm0 = vcmask 130048   ;;  %v93_v48 = vlaneseq }
  0x4a   :  { %149 = vmatprep.mubr.bf16.mxu0 %v1008_v0  ;;  %v833_v2 = vld [vmem:[#allocation2] ss:$8 sps:$4 sm:$0xff]   ;;  %117 = vmatprep.subr.bf16.mxu0 %v831_v1  ;;  %v834_v4 = vld [vmem:[#allocation4 + $0x4] ss:$8 sps:$4 sm:$0xff]   ;;  %v836_v5 = vld [vmem:[#allocation4] ss:$8 sps:$4 sm:$0xff]  }
  0x4b   :  { %v88_v3 = vld [vmem:[%s1134_s0] sm:$0xf]  ;;  %118 = vmatpush1.bf16.msra.mxu0 %v833_v2  ;;  %v837_v6 = vld [vmem:[#allocation4 + $0x14] ss:$8 sps:$4 sm:$0xff]   ;;  %366 = vmatprep.subr.bf16.mxu1 %v834_v4  ;;  %v840_v8 = vld [vmem:[#allocation4 + $0x24] ss:$8 sps:$4 sm:$0xff]  }
  0x4c   :  { %367 = vmatpush1.bf16.msra.mxu1 %v836_v5  ;;  %v839_v7 = vld [vmem:[#allocation4 + $0x10] ss:$8 sps:$4 sm:$0xff]   ;;  %v842_v9 = vld [vmem:[#allocation4 + $0x20] ss:$8 sps:$4 sm:$0xff]   ;;  %v843_v10 = vld [vmem:[#allocation4 + $0x34] ss:$8 sps:$4 sm:$0xff]  }
  0x4d   :  { %368 = vmatprep.subr.bf16.mxu1 %v837_v6  ;;  %v845_v11 = vld [vmem:[#allocation4 + $0x30] ss:$8 sps:$4 sm:$0xff]   ;;  %v846_v12 = vld [vmem:[#allocation4 + $0x44] ss:$8 sps:$4 sm:$0xff]   ;;  %v848_v13 = vld [vmem:[#allocation4 + $0x40] ss:$8 sps:$4 sm:$0xff]  }
  0x4e   :  { %710 = vmatmul.mubr.msk.bf16.vlgmr.msra.gmra.mrb[0].mxu0 %vm113_vm0, %v88_v3  ;;  %v849_v14 = vld [vmem:[#allocation4 + $0x54] ss:$8 sps:$4 sm:$0xff]   ;;  %v851_v15 = vld [vmem:[#allocation4 + $0x50] ss:$8 sps:$4 sm:$0xff]   ;;  %v852_v16 = vld [vmem:[#allocation4 + $0x64] ss:$8 sps:$4 sm:$0xff]  }
  0x4f   :  { %v854_v17 = vld [vmem:[#allocation4 + $0x60] ss:$8 sps:$4 sm:$0xff]   ;;  %v855_v18 = vld [vmem:[#allocation4 + $0x74] ss:$8 sps:$4 sm:$0xff]   ;;  %v857_v19 = vld [vmem:[#allocation4 + $0x70] ss:$8 sps:$4 sm:$0xff]  }
  0x50   :  { %369 = vmatpush1.bf16.msra.mxu1 %v839_v7  ;;  %v858_v20 = vld [vmem:[#allocation4 + $0x84] ss:$8 sps:$4 sm:$0xff]   ;;  %v860_v21 = vld [vmem:[#allocation4 + $0x80] ss:$8 sps:$4 sm:$0xff]   ;;  %v861_v22 = vld [vmem:[#allocation4 + $0x94] ss:$8 sps:$4 sm:$0xff]  }
  0x51   :  { %370 = vmatprep.subr.bf16.mxu1 %v840_v8  ;;  %v863_v23 = vld [vmem:[#allocation4 + $0x90] ss:$8 sps:$4 sm:$0xff]   ;;  %v864_v24 = vld [vmem:[#allocation4 + $0xa4] ss:$8 sps:$4 sm:$0xff]   ;;  %v866_v25 = vld [vmem:[#allocation4 + $0xa0] ss:$8 sps:$4 sm:$0xff]  }
  0x52   :  { %v867_v26 = vld [vmem:[#allocation4 + $0xb4] ss:$8 sps:$4 sm:$0xff]   ;;  %v869_v27 = vld [vmem:[#allocation4 + $0xb0] ss:$8 sps:$4 sm:$0xff]   ;;  %v870_v28 = vld [vmem:[#allocation4 + $0xc4] ss:$8 sps:$4 sm:$0xff]  }
  0x53   :  { %v872_v29 = vld [vmem:[#allocation4 + $0xc0] ss:$8 sps:$4 sm:$0xff]   ;;  %v873_v30 = vld [vmem:[#allocation4 + $0xd4] ss:$8 sps:$4 sm:$0xff]   ;;  %v875_v31 = vld [vmem:[#allocation4 + $0xd0] ss:$8 sps:$4 sm:$0xff]  }
  0x54   :  { %371 = vmatpush1.bf16.msra.mxu1 %v842_v9  ;;  %v876_v32 = vld [vmem:[#allocation4 + $0xe4] ss:$8 sps:$4 sm:$0xff]   ;;  %v878_v33 = vld [vmem:[#allocation4 + $0xe0] ss:$8 sps:$4 sm:$0xff]   ;;  %v879_v34 = vld [vmem:[#allocation4 + $0xf4] ss:$8 sps:$4 sm:$0xff]  }
  0x55   :  { %372 = vmatprep.subr.bf16.mxu1 %v843_v10  ;;  %v881_v35 = vld [vmem:[#allocation4 + $0xf0] ss:$8 sps:$4 sm:$0xff]   ;;  %v882_v36 = vld [vmem:[#allocation6 + $0x40] sm:$0xff]   ;;  %v884_v38 = vld [vmem:[#allocation6 + $0x48] sm:$0xff]   ;;  %v94_v49 = vshrl.u32 %v93_v48, 7  ;;  %v1009_v5 = vmov 0.0  }
  0x56   :  { %v883_v37 = vld [vmem:[#allocation6] sm:$0xff]   ;;  %769 = vmatprep.subr.bf16.mxu0 %v882_v36  ;;  %v885_v39 = vld [vmem:[#allocation6 + $0x8] sm:$0xff]   ;;  %v886_v40 = vld [vmem:[#allocation6 + $0x50] sm:$0xff]   ;;  %vm1010_vm1 = vmmov 0  }
  0x57   :  { %770 = vmatpush3.bf16.msra.mxu0 %v883_v37  ;;  %v887_v41 = vld [vmem:[#allocation6 + $0x10] sm:$0xff]   ;;  %v888_v42 = vld [vmem:[#allocation6 + $0x58] sm:$0xff]   ;;  %v890_v44 = vld [vmem:[#allocation6 + $0x60] sm:$0xff]   ;;  %v95_v50 = vsub.s32 0, %v94_v49  ;;  %v99_v52 = vsub.s32 1, %v94_v49 }
  0x58   :  { %373 = vmatpush1.bf16.msra.mxu1 %v845_v11  ;;  %771 = vmatprep.subr.bf16.mxu0 %v884_v38  ;;  %v889_v43 = vld [vmem:[#allocation6 + $0x18] sm:$0xff]   ;;  %v891_v45 = vld [vmem:[#allocation6 + $0x20] sm:$0xff]   ;;  %v892_v46 = vld [vmem:[#allocation6 + $0x68] sm:$0xff]  }
  0x59   :  { %374 = vmatprep.subr.bf16.mxu1 %v846_v12  ;;  %v893_v47 = vld [vmem:[#allocation6 + $0x28] sm:$0xff]   ;;  %v91_v51 = vld [vmem:[%s1136_s2] sm:$0x3]  ;;  %v896_v3 = vld [vmem:[#allocation6 + $0x78] sm:$0xff]  }
  0x5a   :  { %v96_v53 = vrot.slane %v91_v51, %v95_v50  ;;  %v100_v54 = vrot.slane %v91_v51, %v99_v52  ;;  %v894_v1 = vld [vmem:[#allocation6 + $0x70] sm:$0xff]   ;;  %v897_v4 = vld [vmem:[#allocation6 + $0x38] sm:$0xff]  }
  0x5b   :  { %772 = vmatpush3.bf16.msra.mxu0 %v885_v39  ;;  %v895_v2 = vld [vmem:[#allocation6 + $0x30] sm:$0xff]  }
  0x5c   :  { %375 = vmatpush1.bf16.msra.mxu1 %v848_v13  ;;  %773 = vmatprep.subr.bf16.mxu0 %v886_v40  ;;  %v194_v6 = vld [vmem:[%s1138_s4] sm:$0x3] }
  0x5d   :  { %376 = vmatprep.subr.bf16.mxu1 %v849_v14  ;;  %v199_v7 = vrot.slane %v194_v6, %v95_v50  ;;  %v203_v8 = vrot.slane %v194_v6, %v99_v52  ;;  %v760_v36 = vld [vmem:[%s1142_s8] ss:$0 sm:$0xff] }
  0x5f   :  { %774 = vmatpush3.bf16.msra.mxu0 %v887_v41 }
  0x60   :  { %377 = vmatpush1.bf16.msra.mxu1 %v851_v15  ;;  %775 = vmatprep.subr.bf16.mxu0 %v888_v42 }
  0x61   :  { %378 = vmatprep.subr.bf16.mxu1 %v852_v16 }
  0x63   :  { %776 = vmatpush3.bf16.msra.mxu0 %v889_v43 }
  0x64   :  { %379 = vmatpush1.bf16.msra.mxu1 %v854_v17  ;;  %777 = vmatprep.subr.bf16.mxu0 %v890_v44 }
  0x65   :  { %380 = vmatprep.subr.bf16.mxu1 %v855_v18  ;;  %v898_v18 = vld [vmem:[#allocation7] sm:$0xff]  }
  0x67   :  { %778 = vmatpush3.bf16.msra.mxu0 %v891_v45 }
  0x68   :  { %381 = vmatpush1.bf16.msra.mxu1 %v857_v19  ;;  %779 = vmatprep.subr.bf16.mxu0 %v892_v46 }
  0x69   :  { %382 = vmatprep.subr.bf16.mxu1 %v858_v20  ;;  %v899_v20 = vld [vmem:[#allocation7 + $0x8] sm:$0xff]  }
  0x6b   :  { %780 = vmatpush3.bf16.msra.mxu0 %v893_v47 }
  0x6c   :  { %383 = vmatpush1.bf16.msra.mxu1 %v860_v21  ;;  %781 = vmatprep.subr.bf16.mxu0 %v894_v1  ;;  %v900_v21 = vld [vmem:[#allocation7 + $0x10] sm:$0xff]  }
  0x6d   :  { %384 = vmatprep.subr.bf16.mxu1 %v861_v22  ;;  %v901_v22 = vld [vmem:[#allocation7 + $0x18] sm:$0xff]  }
  0x6f   :  { %782 = vmatpush3.bf16.msra.mxu0 %v895_v2 }
  0x70   :  { %385 = vmatpush1.bf16.msra.mxu1 %v863_v23  ;;  %783 = vmatprep.subr.bf16.mxu0 %v896_v3  ;;  %v902_v23 = vld [vmem:[#allocation7 + $0x20] sm:$0xff]  }
  0x71   :  { %386 = vmatprep.subr.bf16.mxu1 %v864_v24  ;;  %v903_v24 = vld [vmem:[#allocation7 + $0x28] sm:$0xff]  }
  0x73   :  { %784 = vmatpush3.bf16.msra.mxu0 %v897_v4 }
  0x74   :  { %387 = vmatpush1.bf16.msra.mxu1 %v866_v25  ;;  %800 = vmatprep.subr.bf16.mxu0 %v1009_v5  ;;  %v904_v25 = vld [vmem:[#allocation7 + $0x30] sm:$0xff]  }
  0x75   :  { %388 = vmatprep.subr.bf16.mxu1 %v867_v26  ;;  %v905_v26 = vld [vmem:[#allocation7 + $0x38] sm:$0xff]  }
  0x78   :  { %389 = vmatpush1.bf16.msra.mxu1 %v869_v27 }
  0x79   :  { %390 = vmatprep.subr.bf16.mxu1 %v870_v28  ;;  %v743_v28 = vld [vmem:[%s1140_s6] ss:$0 sm:$0xff] }
  0x7c   :  { %391 = vmatpush1.bf16.msra.mxu1 %v872_v29 }
  0x7d   :  { %392 = vmatprep.subr.bf16.mxu1 %v873_v30 }
  0x80   :  { %393 = vmatpush1.bf16.msra.mxu1 %v875_v31 }
  0x81   :  { %394 = vmatprep.subr.bf16.mxu1 %v876_v32 }
  0x84   :  { %395 = vmatpush1.bf16.msra.mxu1 %v878_v33 }
  0x85   :  { %396 = vmatprep.subr.bf16.mxu1 %v879_v34 }
  0x88   :  { %397 = vmatpush1.bf16.msra.mxu1 %v881_v35 }
 0x121   :  { %v151_v55 = vpop.f32.mrb[0].mxu0 }
 0x122   :  { %v152_v56 = vadd.f32 %v151_v55, %v96_v53  ;;  %v153_v57 = vpop.f32.mrb[1].mxu0 }
 0x123   :  { %v154_v58 = vadd.f32 %v153_v57, %v100_v54  ;;  %v155_v59 = vpop.f32.mrb[2].mxu0 }
 0x124   :  { %v158_v60 = vmax.f32 %v152_v56, 0.0  ;;  %v156_v61 = vpop.f32.mrb[3].mxu0 }
 0x125   :  { %v159_v62 = vmax.f32 %v154_v58, 0.0 }
 0x126   :  { %v160_v0 = vpack.c.bf16 %v158_v60, %v158_v60 }
 0x127   :  { %v161_v63 = vpack.c.bf16 %v159_v62, %v159_v62 }
 0x129   :  { %398 = vmatprep.mubr.bf16.mxu1 %v161_v63 }
 0x12a   :  { %399 = vmatmul.mubr.bf16.vlgmr.msra.gmra.mrb[0].mxu1 %v160_v0 }
 0x1fd   :  { %v400_v9 = vpop.f32.mrb[0].mxu1 }
 0x1fe   :  { %v401_v10 = vadd.f32 %v400_v9, %v199_v7  ;;  %v402_v11 = vpop.f32.mrb[1].mxu1 }
 0x1ff   :  { %v403_v12 = vadd.f32 %v402_v11, %v203_v8  ;;  %v404_v13 = vpop.f32.mrb[2].mxu1 }
 0x200   :  { %v407_v14 = vmax.f32 %v401_v10, 0.0  ;;  %v405_v15 = vpop.f32.mrb[3].mxu1 }
 0x201   :  { %v408_v16 = vmax.f32 %v403_v12, 0.0 }
 0x202   :  { %v409_v19 = vpack.c.bf16 %v407_v14, %v407_v14 }
 0x203   :  { %v410_v17 = vpack.c.bf16 %v408_v16, %v408_v16 }
 0x205   :  { %578 = vmatprep.mubr.bf16.mxu0 %v410_v17 }
 0x206   :  { %579 = vmatmul.mubr.bf16.vlgmr.msra.gmra.mrb[4].mxu0 %v409_v19 }
 0x207   :  { %801 = vmatpush3.bf16.msra.mxu0 %v898_v18  ;;  %816 = vmatprep.mubr.msk.bf16.mxu0 %vm1010_vm1, %v1009_v5 }
 0x208   :  { %802 = vmatprep.subr.bf16.mxu0 %v1009_v5 }
 0x20b   :  { %803 = vmatpush3.bf16.msra.mxu0 %v899_v20 }
 0x20c   :  { %804 = vmatprep.subr.bf16.mxu0 %v1009_v5 }
 0x20f   :  { %805 = vmatpush3.bf16.msra.mxu0 %v900_v21 }
 0x210   :  { %806 = vmatprep.subr.bf16.mxu0 %v1009_v5 }
 0x213   :  { %807 = vmatpush3.bf16.msra.mxu0 %v901_v22 }
 0x214   :  { %808 = vmatprep.subr.bf16.mxu0 %v1009_v5 }
 0x217   :  { %809 = vmatpush3.bf16.msra.mxu0 %v902_v23 }
 0x218   :  { %810 = vmatprep.subr.bf16.mxu0 %v1009_v5 }
 0x21b   :  { %811 = vmatpush3.bf16.msra.mxu0 %v903_v24 }
 0x21c   :  { %812 = vmatprep.subr.bf16.mxu0 %v1009_v5 }
 0x21f   :  { %813 = vmatpush3.bf16.msra.mxu0 %v904_v25 }
 0x220   :  { %814 = vmatprep.subr.bf16.mxu0 %v1009_v5 }
 0x223   :  { %815 = vmatpush3.bf16.msra.mxu0 %v905_v26 }
 0x2d9   :  { %v785_v27 = vpop.f32.mrb[4].mxu0 }
 0x2da   :  { %v786_v29 = vpop.f32.mrb[5].mxu0 }
 0x2db   :  { %v787_v30 = vadd.f32 %v786_v29, %v785_v27  ;;  %v788_v31 = vpop.f32.mrb[6].mxu0 }
 0x2dc   :  { %v789_v32 = vpop.f32.mrb[7].mxu0 }
 0x2dd   :  { %v581_v33 = vadd.f32 %v787_v30, %v743_v28 }
 0x2df   :  { %v586_v34 = vmax.f32 %v581_v33, 0.0 }
 0x2e1   :  { %v587_v35 = vpack.c.bf16 %v586_v34, %v586_v34 }
 0x2e3   :  { %817 = vmatmul.mubr.bf16.vlgmr.msra.gmra.mrb[8].mxu0 %v587_v35 }
 0x3b6   :  { %v693_v37 = vpop.f32.mrb[8].mxu0 }
 0x3b7   :  { %v694_v38 = vadd.f32 %v760_v36, %v693_v37  ;;  %v818_v39 = vpop.f32.mrb[9].mxu0 }
 0x3b8   :  { %v696_v40 = vpop.f32.mrb[10].mxu0 }
 0x3b9   :  { %v699_v41 = vpack.c.bf16 %v694_v38, %v694_v38  ;;  %v819_v42 = vpop.f32.mrb[11].mxu0 }
 0x3bb   :  { %700 = vst [vmem:[%s1143_s9] sm:$0xf] %v699_v41 }
 0x3bc   :  { %705 = vsyncpa [#allocation3], 1 }
 0x3bd   :  { %706 = vsyncpa [#allocation5], 1 }
 0x3be   :  { %707 = vsyncpa [#allocation8], 1 }

</bundles_post_ra>
